<compile_context>
chip_gen: v7x
topology: tpu7x:2x2x1
jax: 0.10.0
libtpu: 0.0.40
codegen_flags: <defaults>
</compile_context>

<pallas_src>
import functools

import numpy as np
import jax
import jax.numpy as jnp
from jax.experimental import pallas as pl
from jax.experimental.pallas import tpu as pltpu

INPUT_COLOR_COUNT = 4            # -> input features = 4 * 3 = 12
LAYER_SIZES = [32, 32]           # hidden widths; final output width is 1
N_ROWS = 8                       # rows per forward pass (after view(-1, 12))
_MAX_GROUPS_PER_STEP = 512       # ~4K rows / step; far below any VMEM limit


def _group_std_avg(h3, n):
    """std_layer's appended scalar per group: (G, n, F) -> (G, 1, 1).

    Two-pass variance, exactly matching the PyTorch reference."""
    m = jnp.mean(h3, axis=1, keepdims=True)                     # (G, 1, F)
    var = jnp.mean((h3 - m) ** 2, axis=1, keepdims=True)        # (G, 1, F)
    std = jnp.sqrt(var + 1e-8) * np.float32(np.sqrt(n / (n - 1.0)))
    return jnp.mean(std, axis=2, keepdims=True)                 # (G, 1, 1)


def disc_kernel(x_ref, w0_ref, w1m_ref, vec_ref, scal_ref, o_ref, *,
                groups, rows, lane_groups):
    G, n = groups, rows
    b0 = vec_ref[0:1, :]            # layer-0 bias            (1, F)
    w1s = vec_ref[1:2, :]           # layer-1 std-feature row (1, F)
    b1 = vec_ref[2:3, :]            # layer-1 bias            (1, F)
    w2r = vec_ref[3:4, :]           # layer-2 weight row      (1, F)
    w2s = scal_ref[0]               # layer-2 std-feature weight (scalar, SMEM)
    b2 = scal_ref[1]                # layer-2 bias               (scalar, SMEM)

    # Layer 0: Linear(12 -> 32) + relu, all G*n rows in one MXU matmul.
    h = jnp.dot(x_ref[...], w0_ref[...], preferred_element_type=jnp.float32)
    h = jnp.maximum(h + b0, 0.0)                                # (G*n, F)
    F = h.shape[1]
    h3 = h.reshape(G, n, F)

    # Layer 1: std_layer + Linear(F+1 -> F) + relu.  The appended std column
    # is folded in as (per-group scalar) * (pre-split (1, F) std row).
    s1 = _group_std_avg(h3, n)                                  # (G, 1, 1)
    h1 = jnp.dot(h, w1m_ref[...], preferred_element_type=jnp.float32)
    h1 = jnp.maximum(h1.reshape(G, n, F) + s1 * w1s + b1, 0.0)  # (G, n, F)

    # Layer 2: std_layer + Linear(F+1 -> 1), no activation.  VPU mul + lane
    # reduce (no 1-lane-wide MXU matmul).
    s2 = _group_std_avg(h1, n)                                  # (G, 1, 1)
    proj = jnp.sum(h1 * w2r, axis=-1)                           # (G, n)
    out = proj + s2.reshape(G, 1) * w2s + b2                    # (G, n)

    if lane_groups:
        out = out.T                 # groups along lanes -> dense wide store
    o_ref[...] = out[None].astype(o_ref.dtype)


def init_params(key):
    # Same shapes PyTorch's __init__ builds; deterministic uniform(-k, k)
    # init mirroring nn.Linear's default (k = 1/sqrt(fan_in)).  Weights are
    # stored as (in_features, out_features) so the kernel does x @ w.
    input_sizes = [INPUT_COLOR_COUNT * 3] + [ls + 1 for ls in LAYER_SIZES]
    output_sizes = LAYER_SIZES + [1]
    params = []
    for fi, fo in zip(input_sizes, output_sizes):
        key, kw, kb = jax.random.split(key, 3)
        bound = 1.0 / np.sqrt(fi)
        w = jax.random.uniform(kw, (fi, fo), jnp.float32, -bound, bound)
        b = jax.random.uniform(kb, (fo,), jnp.float32, -bound, bound)
        params.append((w, b))
    return params


def _pack_params(params):
    """Host-side packing: 3 VMEM slabs + one (2,) SMEM scalar vector."""
    (w0, b0), (w1, b1), (w2, b2) = params
    k1 = w1.shape[0] - 1
    k2 = w2.shape[0] - 1
    vecs = jnp.concatenate(
        [b0.reshape(1, -1),          # layer-0 bias
         w1[k1:, :],                 # layer-1 std-feature row
         b1.reshape(1, -1),          # layer-1 bias
         w2[:k2, :].T],              # layer-2 weight as a (1, F) row
        axis=0).astype(jnp.float32)                              # (4, F)
    scal = jnp.stack([w2[k2, 0], b2[0]]).astype(jnp.float32)     # (2,)
    return (w0.astype(jnp.float32), w1[:k1, :].astype(jnp.float32),
            vecs, scal)


def _num_tensorcores():
    """2 TensorCores on v7x, 1 on v5e / v6e (perf-only heuristic)."""
    try:
        kind = jax.devices()[0].device_kind.lower()
    except Exception:
        return 1
    return 2 if ("v7" in kind or "7x" in kind) else 1


def _choose_tiling(num_groups, groups_per_step=None):
    n_tc = _num_tensorcores()
    if groups_per_step is None:
        g = min(pl.cdiv(num_groups, n_tc), _MAX_GROUPS_PER_STEP)
    else:
        g = max(1, min(groups_per_step, num_groups))
    steps = pl.cdiv(num_groups, g)
    if num_groups >= n_tc and steps % n_tc:
        steps = pl.cdiv(steps, n_tc) * n_tc      # balance steps across cores
        g = pl.cdiv(num_groups, steps)
    return steps, g


def _disc_pallas(xf, wargs, steps, groups_per_step, group_rows, lane_groups):
    g, n = groups_per_step, group_rows
    w0, w1m, vecs, scal = wargs
    in_f = xf.shape[-1]
    kern = functools.partial(disc_kernel, groups=g, rows=n,
                             lane_groups=lane_groups)
    out_block = (1, n, g) if lane_groups else (1, g, n)
    in_specs = [
        pl.BlockSpec((g * n, in_f), lambda i: (i, 0)),
        pl.BlockSpec(w0.shape, lambda i: (0, 0)),
        pl.BlockSpec(w1m.shape, lambda i: (0, 0)),
        pl.BlockSpec(vecs.shape, lambda i: (0, 0)),
        pl.BlockSpec(scal.shape, lambda i: (0,),
                     memory_space=pltpu.MemorySpace.SMEM),
    ]
    out_specs = pl.BlockSpec(out_block, lambda i: (i, 0, 0))
    return pl.pallas_call(
        kern,
        out_shape=jax.ShapeDtypeStruct((steps,) + out_block[1:], jnp.float32),
        grid_spec=pltpu.PrefetchScalarGridSpec(
            num_scalar_prefetch=0,
            grid=(steps,),
            in_specs=in_specs,
            out_specs=out_specs),
        compiler_params=pltpu.CompilerParams(
            dimension_semantics=("parallel",)),
    )(xf, w0, w1m, vecs, scal)


def _forward_groups(xg, params, groups_per_step=None):
    """xg: (num_groups, n, 12) -> (num_groups, n) discriminator outputs."""
    b, n, in_f = xg.shape
    assert n >= 2, "minibatch std needs at least 2 rows (Bessel factor)"
    steps, g = _choose_tiling(b, groups_per_step)
    pad = steps * g - b
    if pad:
        xg = jnp.concatenate(
            [xg, jnp.zeros((pad, n, in_f), xg.dtype)], axis=0)
    lane_groups = g >= 8                 # lane-dense layout only worth it then
    out = _disc_pallas(xg.reshape(steps * g * n, in_f), _pack_params(params),
                       steps, g, n, lane_groups)
    if lane_groups:
        out = out.transpose(0, 2, 1)     # (steps, g, n)
    return out.reshape(steps * g, n)[:b]


def discriminator_forward(x, params):
    """Single forward pass; matches Discriminator.forward(x) exactly."""
    xf = jnp.asarray(x, jnp.float32).reshape(-1, INPUT_COLOR_COUNT * 3)
    n = xf.shape[0]
    return _forward_groups(xf[None], params).reshape(n, 1)


def discriminator_forward_batched(xs, params, groups_per_step=None):
    """B independent forward passes fused into one gridded pallas_call."""
    xs = jnp.asarray(xs, jnp.float32)
    b = xs.shape[0]
    xg = xs.reshape(b, -1, INPUT_COLOR_COUNT * 3)
    return _forward_groups(xg, params, groups_per_step)[..., None]   # (B,n,1)


def _reference_forward(x, params):
    # Pure-JAX reference reproducing the PyTorch forward (two-pass std).
    h = jnp.asarray(x, jnp.float32).reshape(-1, INPUT_COLOR_COUNT * 3)
    n = h.shape[0]
    for i, (w, b) in enumerate(params):
        if i > 0:
            mean = h.mean(axis=0)
            var = ((h - mean) ** 2).mean(axis=0)
            std = jnp.sqrt(var + 1e-8) * np.sqrt(n / (n - 1.0))
            avg = jnp.full((n, 1), std.mean(), dtype=h.dtype)
            h = jnp.concatenate([h, avg], axis=1)
        h = h @ w + b
        if i < len(params) - 1:
            h = jnp.maximum(h, 0.0)
    return h


if __name__ == "__main__":
    key = jax.random.PRNGKey(0)
    kx, kp = jax.random.split(key)
    params = init_params(kp)

    # Single forward (exact module semantics): 8 colors of shape (4, 3).
    x1 = jax.random.normal(kx, (N_ROWS, INPUT_COLOR_COUNT, 3), jnp.float32)
    out1 = jax.block_until_ready(discriminator_forward(x1, params))
    ref1 = _reference_forward(x1, params)
    np.testing.assert_allclose(np.asarray(out1), np.asarray(ref1),
                               rtol=1e-4, atol=1e-5)

    # Batched: 256 independent forwards in one launch.  On v5e/v6e this is a
    # single grid step (256 groups -> 256-lane-wide dense output stores); on
    # v7x it is 2 balanced steps of 128 groups, one per TensorCore.
    B = 256
    xs = jax.random.normal(kx, (B, N_ROWS, INPUT_COLOR_COUNT, 3), jnp.float32)
    outb = jax.block_until_ready(discriminator_forward_batched(xs, params))
    refb = jax.vmap(lambda x: _reference_forward(x, params))(xs)
    np.testing.assert_allclose(np.asarray(outb), np.asarray(refb),
                               rtol=1e-4, atol=1e-5)

    print("KERNEL_OK")
</pallas_src>

<mosaic_0001>
module attributes {stable_mosaic.version = 11 : i64} {
  func.func @disc_kernel(%arg0: i32, %arg1: memref<8x12xf32, #tpu.memory_space<vmem>>, %arg2: memref<12x32xf32, #tpu.memory_space<vmem>>, %arg3: memref<32x32xf32, #tpu.memory_space<vmem>>, %arg4: memref<4x32xf32, #tpu.memory_space<vmem>>, %arg5: memref<2xf32, #tpu.memory_space<smem>>, %arg6: memref<1x1x8xf32, #tpu.memory_space<vmem>>) attributes {dimension_semantics = [#tpu.dimension_semantics<parallel>], iteration_bounds = array<i64: 1>, scalar_prefetch = 0 : i64, scratch_operands = 0 : i64, tpu.core_type = #tpu.core_type<tc>, window_params = [{transform_indices = @transform_0, window_bounds = array<i64: 8, 12>}, {pipeline_mode = #tpu.pipeline_mode<synchronous>, transform_indices = @transform_1, window_bounds = array<i64: 12, 32>}, {pipeline_mode = #tpu.pipeline_mode<synchronous>, transform_indices = @transform_2, window_bounds = array<i64: 32, 32>}, {pipeline_mode = #tpu.pipeline_mode<synchronous>, transform_indices = @transform_3, window_bounds = array<i64: 4, 32>}, {transform_indices = @transform_4, window_bounds = array<i64: 2>}, {transform_indices = @transform_5, window_bounds = array<i64: 1, 1, 8>}]} {
    %c0 = arith.constant 0 : index
    %c0_0 = arith.constant 0 : index
    %0 = vector.load %arg4[%c0, %c0_0] : memref<4x32xf32, #tpu.memory_space<vmem>>, vector<1x32xf32>
    %c1 = arith.constant 1 : index
    %c0_1 = arith.constant 0 : index
    %1 = vector.load %arg4[%c1, %c0_1] : memref<4x32xf32, #tpu.memory_space<vmem>>, vector<1x32xf32>
    %c2 = arith.constant 2 : index
    %c0_2 = arith.constant 0 : index
    %2 = vector.load %arg4[%c2, %c0_2] : memref<4x32xf32, #tpu.memory_space<vmem>>, vector<1x32xf32>
    %c3 = arith.constant 3 : index
    %c0_3 = arith.constant 0 : index
    %3 = vector.load %arg4[%c3, %c0_3] : memref<4x32xf32, #tpu.memory_space<vmem>>, vector<1x32xf32>
    %c0_4 = arith.constant 0 : index
    %4 = memref.load %arg5[%c0_4] : memref<2xf32, #tpu.memory_space<smem>>
    %c1_5 = arith.constant 1 : index
    %5 = memref.load %arg5[%c1_5] : memref<2xf32, #tpu.memory_space<smem>>
    %c0_6 = arith.constant 0 : index
    %c0_7 = arith.constant 0 : index
    %6 = vector.load %arg1[%c0_6, %c0_7] : memref<8x12xf32, #tpu.memory_space<vmem>>, vector<8x12xf32>
    %c0_8 = arith.constant 0 : index
    %c0_9 = arith.constant 0 : index
    %7 = vector.load %arg2[%c0_8, %c0_9] : memref<12x32xf32, #tpu.memory_space<vmem>>, vector<12x32xf32>
    %cst = arith.constant dense<0.000000e+00> : vector<8x32xf32>
    %8 = tpu.matmul %6, %7, %cst {dimension_numbers = #tpu.dot_dimension_numbers<[1], [0], [0], [1], [0, 0, 1, 1], [], []>} : vector<8x12xf32>, vector<12x32xf32>, vector<8x32xf32> -> vector<8x32xf32>
    %9 = vector.broadcast %0 : vector<1x32xf32> to vector<8x32xf32>
    %10 = arith.addf %8, %9 : vector<8x32xf32>
    %cst_10 = arith.constant 0.000000e+00 : f32
    %11 = vector.broadcast %cst_10 : f32 to vector<8x32xf32>
    %12 = arith.maximumf %10, %11 : vector<8x32xf32>
    %13 = vector.shape_cast %12 : vector<8x32xf32> to vector<1x8x32xf32>
    %cst_11 = arith.constant dense<0.000000e+00> : vector<1x32xf32>
    %14 = vector.multi_reduction <add>, %13, %cst_11 [1] : vector<1x8x32xf32> to vector<1x32xf32>
    %15 = vector.shape_cast %14 : vector<1x32xf32> to vector<1x1x32xf32>
    %cst_12 = arith.constant 8.000000e+00 : f32
    %16 = vector.broadcast %cst_12 : f32 to vector<1x1x32xf32>
    %17 = arith.divf %15, %16 : vector<1x1x32xf32>
    %18 = vector.broadcast %17 : vector<1x1x32xf32> to vector<1x8x32xf32>
    %19 = arith.subf %13, %18 : vector<1x8x32xf32>
    %20 = arith.mulf %19, %19 : vector<1x8x32xf32>
    %cst_13 = arith.constant dense<0.000000e+00> : vector<1x32xf32>
    %21 = vector.multi_reduction <add>, %20, %cst_13 [1] : vector<1x8x32xf32> to vector<1x32xf32>
    %22 = vector.shape_cast %21 : vector<1x32xf32> to vector<1x1x32xf32>
    %cst_14 = arith.constant 8.000000e+00 : f32
    %23 = vector.broadcast %cst_14 : f32 to vector<1x1x32xf32>
    %24 = arith.divf %22, %23 : vector<1x1x32xf32>
    %cst_15 = arith.constant 9.99999993E-9 : f32
    %25 = vector.broadcast %cst_15 : f32 to vector<1x1x32xf32>
    %26 = arith.addf %24, %25 : vector<1x1x32xf32>
    %27 = math.sqrt %26 : vector<1x1x32xf32>
    %cst_16 = arith.constant 1.06904495 : f32
    %28 = vector.broadcast %cst_16 : f32 to vector<1x1x32xf32>
    %29 = arith.mulf %27, %28 : vector<1x1x32xf32>
    %cst_17 = arith.constant dense<0.000000e+00> : vector<1x1xf32>
    %30 = vector.multi_reduction <add>, %29, %cst_17 [2] : vector<1x1x32xf32> to vector<1x1xf32>
    %31 = vector.shape_cast %30 : vector<1x1xf32> to vector<1x1x1xf32>
    %cst_18 = arith.constant 3.200000e+01 : f32
    %32 = vector.broadcast %cst_18 : f32 to vector<1x1x1xf32>
    %33 = arith.divf %31, %32 : vector<1x1x1xf32>
    %c0_19 = arith.constant 0 : index
    %c0_20 = arith.constant 0 : index
    %34 = vector.load %arg3[%c0_19, %c0_20] : memref<32x32xf32, #tpu.memory_space<vmem>>, vector<32x32xf32>
    %cst_21 = arith.constant dense<0.000000e+00> : vector<8x32xf32>
    %35 = tpu.matmul %12, %34, %cst_21 {dimension_numbers = #tpu.dot_dimension_numbers<[1], [0], [0], [1], [0, 0, 1, 1], [], []>} : vector<8x32xf32>, vector<32x32xf32>, vector<8x32xf32> -> vector<8x32xf32>
    %36 = vector.shape_cast %35 : vector<8x32xf32> to vector<1x8x32xf32>
    %37 = vector.shape_cast %1 : vector<1x32xf32> to vector<1x1x32xf32>
    %38 = vector.broadcast %33 : vector<1x1x1xf32> to vector<1x1x32xf32>
    %39 = arith.mulf %38, %37 : vector<1x1x32xf32>
    %40 = vector.broadcast %39 : vector<1x1x32xf32> to vector<1x8x32xf32>
    %41 = arith.addf %36, %40 : vector<1x8x32xf32>
    %42 = vector.shape_cast %2 : vector<1x32xf32> to vector<1x1x32xf32>
    %43 = vector.broadcast %42 : vector<1x1x32xf32> to vector<1x8x32xf32>
    %44 = arith.addf %41, %43 : vector<1x8x32xf32>
    %cst_22 = arith.constant 0.000000e+00 : f32
    %45 = vector.broadcast %cst_22 : f32 to vector<1x8x32xf32>
    %46 = arith.maximumf %44, %45 : vector<1x8x32xf32>
    %cst_23 = arith.constant dense<0.000000e+00> : vector<1x32xf32>
    %47 = vector.multi_reduction <add>, %46, %cst_23 [1] : vector<1x8x32xf32> to vector<1x32xf32>
    %48 = vector.shape_cast %47 : vector<1x32xf32> to vector<1x1x32xf32>
    %cst_24 = arith.constant 8.000000e+00 : f32
    %49 = vector.broadcast %cst_24 : f32 to vector<1x1x32xf32>
    %50 = arith.divf %48, %49 : vector<1x1x32xf32>
    %51 = vector.broadcast %50 : vector<1x1x32xf32> to vector<1x8x32xf32>
    %52 = arith.subf %46, %51 : vector<1x8x32xf32>
    %53 = arith.mulf %52, %52 : vector<1x8x32xf32>
    %cst_25 = arith.constant dense<0.000000e+00> : vector<1x32xf32>
    %54 = vector.multi_reduction <add>, %53, %cst_25 [1] : vector<1x8x32xf32> to vector<1x32xf32>
    %55 = vector.shape_cast %54 : vector<1x32xf32> to vector<1x1x32xf32>
    %cst_26 = arith.constant 8.000000e+00 : f32
    %56 = vector.broadcast %cst_26 : f32 to vector<1x1x32xf32>
    %57 = arith.divf %55, %56 : vector<1x1x32xf32>
    %cst_27 = arith.constant 9.99999993E-9 : f32
    %58 = vector.broadcast %cst_27 : f32 to vector<1x1x32xf32>
    %59 = arith.addf %57, %58 : vector<1x1x32xf32>
    %60 = math.sqrt %59 : vector<1x1x32xf32>
    %cst_28 = arith.constant 1.06904495 : f32
    %61 = vector.broadcast %cst_28 : f32 to vector<1x1x32xf32>
    %62 = arith.mulf %60, %61 : vector<1x1x32xf32>
    %cst_29 = arith.constant dense<0.000000e+00> : vector<1x1xf32>
    %63 = vector.multi_reduction <add>, %62, %cst_29 [2] : vector<1x1x32xf32> to vector<1x1xf32>
    %64 = vector.shape_cast %63 : vector<1x1xf32> to vector<1x1x1xf32>
    %cst_30 = arith.constant 3.200000e+01 : f32
    %65 = vector.broadcast %cst_30 : f32 to vector<1x1x1xf32>
    %66 = arith.divf %64, %65 : vector<1x1x1xf32>
    %67 = vector.shape_cast %3 : vector<1x32xf32> to vector<1x1x32xf32>
    %68 = vector.broadcast %67 : vector<1x1x32xf32> to vector<1x8x32xf32>
    %69 = arith.mulf %46, %68 : vector<1x8x32xf32>
    %cst_31 = arith.constant dense<0.000000e+00> : vector<1x8xf32>
    %70 = vector.multi_reduction <add>, %69, %cst_31 [2] : vector<1x8x32xf32> to vector<1x8xf32>
    %71 = vector.shape_cast %66 : vector<1x1x1xf32> to vector<1x1xf32>
    %72 = vector.broadcast %4 : f32 to vector<1x1xf32>
    %73 = arith.mulf %71, %72 : vector<1x1xf32>
    %74 = vector.broadcast %73 : vector<1x1xf32> to vector<1x8xf32>
    %75 = arith.addf %70, %74 : vector<1x8xf32>
    %76 = vector.broadcast %5 : f32 to vector<1x8xf32>
    %77 = arith.addf %75, %76 : vector<1x8xf32>
    %78 = vector.shape_cast %77 : vector<1x8xf32> to vector<1x1x8xf32>
    %c0_32 = arith.constant 0 : index
    %c0_33 = arith.constant 0 : index
    %c0_34 = arith.constant 0 : index
    %79 = vector.load %arg6[%c0_32, %c0_33, %c0_34] : memref<1x1x8xf32, #tpu.memory_space<vmem>>, vector<1x1x8xf32>
    tpu.vector_store %arg6[%c0_32, %c0_33, %c0_34], %78 {strides = array<i32>} : memref<1x1x8xf32, #tpu.memory_space<vmem>>, vector<1x1x8xf32>,
    return
  }
  func.func @transform_0(%arg0: i32) -> (i32, i32) {
    %c0_i32 = arith.constant 0 : i32
    %c0_i32_0 = arith.constant 0 : i32
    return %arg0, %c0_i32 : i32, i32
  }
  func.func @transform_1(%arg0: i32) -> (i32, i32) {
    %c0_i32 = arith.constant 0 : i32
    %c0_i32_0 = arith.constant 0 : i32
    %c0_i32_1 = arith.constant 0 : i32
    return %c0_i32, %c0_i32_0 : i32, i32
  }
  func.func @transform_2(%arg0: i32) -> (i32, i32) {
    %c0_i32 = arith.constant 0 : i32
    %c0_i32_0 = arith.constant 0 : i32
    %c0_i32_1 = arith.constant 0 : i32
    return %c0_i32, %c0_i32_0 : i32, i32
  }
  func.func @transform_3(%arg0: i32) -> (i32, i32) {
    %c0_i32 = arith.constant 0 : i32
    %c0_i32_0 = arith.constant 0 : i32
    %c0_i32_1 = arith.constant 0 : i32
    return %c0_i32, %c0_i32_0 : i32, i32
  }
  func.func @transform_4(%arg0: i32) -> i32 {
    %c0_i32 = arith.constant 0 : i32
    %c0_i32_0 = arith.constant 0 : i32
    return %c0_i32 : i32
  }
  func.func @transform_5(%arg0: i32) -> (i32, i32, i32) {
    %c0_i32 = arith.constant 0 : i32
    %c0_i32_0 = arith.constant 0 : i32
    %c0_i32_1 = arith.constant 0 : i32
    return %arg0, %c0_i32, %c0_i32_0 : i32, i32, i32
  }
}

</mosaic_0001>

<bundles_post_ra>
// kernel: tpu_custom_call.1
= control target key start
LH: loop header
LB: loop body
LE: loop exit
PB: predicated region body
PF: predicated region fallthrough
CT: control target
= control target key end

     0   :  { %10 = vsyncpa [#allocation3], 0  ;;  %s643_s0 = inlined_call_operand.hbm [shape: f32[8,12], index: 0, kind: input, shape index: {}]   ;;  %s644_s1 = inlined_call_operand.hbm [shape: f32[12,32], index: 1, kind: input, shape index: {}]   ;;  %s645_s2 = inlined_call_operand.hbm [shape: f32[32,32], index: 2, kind: input, shape index: {}]   ;;  %s646_s3 = inlined_call_operand.vmem [shape: f32[4,32], index: 3, kind: input, shape index: {}]   ;;  %s647_s4 = inlined_call_operand.vmem [shape: f32[2], index: 4, kind: input, shape index: {}]   ;;  %s648_s5 = inlined_call_operand.hbm [shape: f32[1,1,8], index: 5, kind: output, shape index: {}]  }
   0x1   :  { %11 = vsyncpa [#allocation7], 0 }
   0x2   :  { %12 = vsyncpa [#allocation5], 0 }
   0x3   :  { %13 = vsyncpa [#allocation4], 0  ;;  %s525_s18 = smov [#allocation6]   ;;  %s417_s22 = scalar_lea.hbm %s644_s1, 256 }
   0x4   :  { %s29_s19 = sshll.u32 %s525_s18, 4  ;;  %p418_p0 = scmp.ne.s32.totalorder %s644_s1, %s417_s22  ;;  %s30_s19 = int_to_ptr.vmem [resolvable:$true] %s29_s19 }
   0x5   :  { %p421_p1 = scmp.lt.u32.totalorder %s417_s22, %s644_s1 }
   0x7   :  { %p423_p2 = pnand %p421_p1, %p418_p0 }
   0x9   :  { %426 = shalt.err (!%p423_p2)
}
   0xa   :  { %s427_s27 = scalar_lea.vmem %s30_s19, 256  ;;  %p432_p4 = scmp.lt.s32.totalorder %s30_s19, %s30_s19 }
   0xb   :  { %p428_p3 = scmp.ne.s32.totalorder %s30_s19, %s427_s27  ;;  %p433_p5 = scmp.lt.s32.totalorder %s427_s27, %s427_s27 }
   0xd   :  { %p434_p6 = por %p433_p5, %p432_p4 }
   0xf   :  { %p435_p7 = pnand %p434_p6, %p428_p3 }
  0x11   :  { %438 = shalt.err (!%p435_p7)
}
  0x12   :  { %s526_s28 = smov 128   ;;  %s527_s29 = smov 8  }
  0x13   :  { %35 = dma.hbm_to_vmem [thread:$0]  %s644_s1, 256, %s30_s19, [#allocation7], %s526_s28, %s526_s28, %s527_s29  }
  0x14   :  { %s528_s7 = smov [#allocation2]   ;;  %s529_s9 = smov [#allocation8]  }
  0x15   :  { %s20_s8 = sshll.u32 %s528_s7, 4  ;;  %s41_s10 = sshll.u32 %s529_s9, 4  ;;  %s21_s8 = int_to_ptr.vmem [resolvable:$true] %s20_s8  ;;  %s42_s10 = int_to_ptr.vmem [resolvable:$true] %s41_s10 }
  0x16   :  { %s439_s13 = scalar_lea.hbm %s643_s0, 128 }
  0x17   :  { %p440_p8 = scmp.ne.s32.totalorder %s643_s0, %s439_s13  ;;  %p443_p9 = scmp.lt.u32.totalorder %s439_s13, %s643_s0 }
  0x19   :  { %p445_p10 = pnand %p443_p9, %p440_p8 }
  0x1b   :  { %448 = shalt.err (!%p445_p10)
}
  0x1c   :  { %s449_s1 = scalar_lea.vmem %s21_s8, 128  ;;  %p454_p12 = scmp.lt.s32.totalorder %s21_s8, %s21_s8 }
  0x1d   :  { %p450_p11 = scmp.ne.s32.totalorder %s21_s8, %s449_s1  ;;  %p455_p13 = scmp.lt.s32.totalorder %s449_s1, %s449_s1 }
  0x1f   :  { %p456_p0 = por %p455_p13, %p454_p12 }
  0x21   :  { %p457_p1 = pnand %p456_p0, %p450_p11 }
  0x23   :  { %460 = shalt.err (!%p457_p1)
}
  0x24   :  { %23 = dma.hbm_to_vmem [thread:$0]  %s643_s0, 128, %s21_s8, [#allocation3]  }
  0x25   :  { %s56_s22 = sshll.u32 %s647_s4, 4  ;;  %s461_s25 = scalar_lea.hbm %s645_s2, 512  ;;  %s57_s22 = int_to_ptr.vmem [resolvable:$true] %s56_s22 }
  0x26   :  { %p462_p2 = scmp.ne.s32.totalorder %s645_s2, %s461_s25  ;;  %p465_p3 = scmp.lt.u32.totalorder %s461_s25, %s645_s2 }
  0x28   :  { %p467_p4 = pnand %p465_p3, %p462_p2 }
  0x2a   :  { %470 = shalt.err (!%p467_p4)
}
  0x2b   :  { %s471_s0 = scalar_lea.vmem %s42_s10, 512  ;;  %p476_p6 = scmp.lt.s32.totalorder %s42_s10, %s42_s10 }
  0x2c   :  { %p472_p5 = scmp.ne.s32.totalorder %s42_s10, %s471_s0  ;;  %p477_p7 = scmp.lt.s32.totalorder %s471_s0, %s471_s0 }
  0x2e   :  { %p478_p8 = por %p477_p7, %p476_p6 }
  0x30   :  { %p479_p9 = pnand %p478_p8, %p472_p5 }
  0x32   :  { %482 = shalt.err (!%p479_p9)
}
  0x33   :  { %47 = dma.hbm_to_vmem [thread:$0]  %s645_s2, 512, %s42_s10, [#allocation7], %s526_s28, %s526_s28, %s527_s29  }
  0x34   :  { %s483_s8 = scalar_lea.vmem %s57_s22, 16  ;;  %p488_p11 = scmp.lt.s32.totalorder %s57_s22, %s57_s22 }
  0x35   :  { %p484_p10 = scmp.ne.s32.totalorder %s57_s22, %s483_s8  ;;  %p489_p12 = scmp.lt.s32.totalorder %s483_s8, %s483_s8 }
  0x37   :  { %p490_p13 = por %p489_p12, %p488_p11 }
  0x39   :  { %p491_p0 = pnand %p490_p13, %p484_p10 }
  0x3b   :  { %494 = shalt.err (!%p491_p0)
}
  0x3c   :  { %s530_s9 = smov [#allocation9]  }
  0x3d   :  { %59 = dma.vmem_to_smem %s57_s22, 16, %s530_s9, [#allocation5]  }
  0x3e   :  { %517 = dma.done.wait [#allocation3], 128  }
  0x3f   :  { %518 = vsyncadd [#allocation3], 4294967168 }
  0x40   :  { %519 = dma.done.wait [#allocation7], 768  }
  0x41   :  { %520 = vsyncadd [#allocation7], 4294966528 }
  0x42   :  { %521 = dma.done.wait [#allocation5], 16  }
  0x43   :  { %522 = vsyncadd [#allocation5], 4294967280 }
  0x44   :  { %72 = sfence }
  0x45   :  { %v80_v0 = vld [vmem:[#allocation6] sm:$0xff]  ;;  %v81_v1 = vld [vmem:[#allocation6 + $0x8] sm:$0xf]  ;;  %vm90_vm0 = vcmask 1043456   ;;  %v531_v2 = vmov 0.0|0.0   ;;  %vm532_vm1 = vmmov 1   ;;  %v277_v43 = vlaneseq }
  0x46   :  { %392 = vmatprep.subr.bf16.mxu0 %v531_v2  ;;  %v393_v3 = vpack.c.bf16 %v81_v1, %v80_v0  ;;  %vm394_vm2 = vmpackc.low %vm90_vm0, %vm532_vm1  ;;  %396 = vmatprep.subr.bf16.mxu1 %v531_v2  ;;  %v199_v4 = vld [vmem:[#allocation8] sm:$0xff]  ;;  %vm533_vm3 = vmmov 0   ;;  %v534_v5 = vmov 0.0   ;;  %v200_v6 = vld [vmem:[#allocation8 + $0x8] sm:$0xff]  ;;  %vm86_vm4 = vcmask 97280   ;;  %s359_s15 = sld [smem:[#allocation9 + $0x1]] }
  0x47   :  { %378 = vmatprep.mubr.msk.f32.mxu0 %vm533_vm3, %v534_v5  ;;  %389 = vmatprep.mubr.msk.f32.mxu1 %vm533_vm3, %v534_v5  ;;  %v79_v7 = vld [vmem:[#allocation2] sm:$0xff]  ;;  %v397_v8 = vpack.c.bf16 %v200_v6, %v199_v4  ;;  %v201_v9 = vld [vmem:[#allocation8 + $0x10] sm:$0xff]  ;;  %v202_v10 = vld [vmem:[#allocation8 + $0x18] sm:$0xff]  ;;  %vm165_vm5 = vcmask 261120   ;;  %v278_v46 = vshrl.u32 %v277_v43, 7  ;;  %s535_s16 = smov [#allocation10]  }
  0x48   :  { %395 = vmatpush3.bf16.msk.msra.mxu0 %vm394_vm2, %v393_v3  ;;  %v400_v11 = vpack.c.bf16 %v202_v10, %v201_v9  ;;  %v360_v12 = vld [vmem:[%s646_s3] ss:$0 sm:$0xff]  ;;  %v74_v47 = vld [vmem:[%s646_s3 + $0x1] sm:$0x1]  ;;  %v364_v51 = vld [vmem:[%s646_s3 + $0x2] ss:$0 sm:$0xff] }
  0x49   :  { %398 = vmatpush3.bf16.msra.mxu1 %v397_v8  ;;  %v279_v49 = vsub.s32 0, %v278_v46  ;;  %v365_v56 = vld [vmem:[%s646_s3 + $0x3] ss:$0 sm:$0xff]  ;;  %s77_s3 = sld [smem:[#allocation9]]  ;;  %s348_s17 = sshll.u32 %s535_s16, 4  ;;  %vm340_vm10 = vcmask 57344   ;;  %s349_s17 = int_to_ptr.vmem [resolvable:$true] %s348_s17 }
  0x4a   :  { %399 = vmatprep.subr.bf16.mxu1 %v531_v2  ;;  %s495_s1 = scalar_lea.vmem %s349_s17, 16  ;;  %s499_s18 = scalar_lea.vmem %s349_s17, 32 }
  0x4b   :  { %379 = vmatmul.mubr.msk.f32.vlgmr.msra.gmra.mrb[0].mxu0 %vm86_vm4, %v79_v7  ;;  %p496_p1 = scmp.ne.s32.totalorder %s349_s17, %s495_s1  ;;  %p500_p2 = scmp.lt.s32.totalorder %s349_s17, %s349_s17 }
  0x4c   :  { %p501_p3 = scmp.lt.s32.totalorder %s499_s18, %s495_s1 }
  0x4d   :  { %401 = vmatpush3.bf16.msra.mxu1 %v400_v11 }
  0x4e   :  { %p502_p4 = por %p501_p3, %p500_p2 }
  0x50   :  { %p503_p5 = pnand %p502_p4, %p496_p1 }
 0x11e   :  { %v160_v13 = vpop.f32.mrb[0].mxu0 }
 0x11f   :  { %v161_v14 = vadd.f32 %v360_v12, %v160_v13  ;;  %v380_v15 = vpop.f32.mrb[1].mxu0 }
 0x121   :  { %v164_v16 = vmax.f32 %v161_v14, 0.0 }
 0x123   :  { %v166_v17 = vsel %vm165_vm5, %v164_v16, 0.0  ;;  %390 = vmatmul.mubr.msk.f32.vlgmr.msra.gmra.mrb[0].mxu1 %vm165_vm5, %v164_v16 }
 0x124   :  { %v167_v18 = vrot.slane %v166_v17, 4 }
 0x126   :  { %v168_v19 = vadd.f32 %v167_v18, %v166_v17 }
 0x128   :  { %v169_v20 = vrot.slane %v168_v19, 2 }
 0x12a   :  { %v170_v21 = vadd.f32 %v169_v20, %v168_v19 }
 0x12c   :  { %v171_v22 = vrot.slane %v170_v21, 1 }
 0x12e   :  { %v172_v23 = vadd.f32 %v171_v22, %v170_v21  ;;  %v327_v22 = vstv %s77_s3 }
 0x130   :  { %v174_v24 = vmul.f32 0.125, %v172_v23 }
 0x132   :  { %v175_v25 = vsub.f32 %v164_v16, %v174_v24 }
 0x134   :  { %v176_v26 = vmul.f32 %v175_v25, %v175_v25  ;;  %v334_v25 = vand.u32 127, %v277_v43 }
 0x136   :  { %v177_v27 = vsel %vm165_vm5, %v176_v26, 0.0 }
 0x137   :  { %v178_v28 = vrot.slane %v177_v27, 4 }
 0x139   :  { %v179_v29 = vadd.f32 %v178_v28, %v177_v27  ;;  %v330_v28 = vstv %s359_s15 }
 0x13b   :  { %v180_v30 = vrot.slane %v179_v29, 2 }
 0x13d   :  { %v181_v31 = vadd.f32 %v180_v30, %v179_v29  ;;  %v337_v30 = vsub.s32 %v334_v25, %v278_v46 }
 0x13f   :  { %v182_v32 = vrot.slane %v181_v31, 1 }
 0x141   :  { %v183_v33 = vadd.f32 %v182_v32, %v181_v31 }
 0x143   :  { %v184_v34 = vmul.f32 0.125, %v183_v33 }
 0x145   :  { %v185_v35 = vadd.f32 1e-08, %v184_v34 }
 0x147   :  { %413 = vrsqrt.f32 %v185_v35  ;;  %vm188_vm6 = vcmp.eq.f32.partialorder %v185_v35, inf  ;;  %v191_v38 = vand.u32 2147483648, %v185_v35  ;;  %vm190_vm7 = vcmp.eq.f32.partialorder %v185_v35, 0.0 }
 0x151   :  { %v414_v36 = vpop.eup %413 }
 0x152   :  { %v187_v37 = vmul.f32 %v414_v36, %v185_v35 }
 0x154   :  { %v189_v39 = vsel %vm188_vm6, %v185_v35, %v187_v37 }
 0x155   :  { %v192_v40 = vsel %vm190_vm7, %v191_v38, %v189_v39 }
 0x156   :  { %v193_v41 = vmul.f32 1.069045, %v192_v40 }
 0x158   :  { %v194_v42 = vsel %vm165_vm5, %v193_v41, 0.0 }
 0x159   :  { %195 = vadd.xlane.f32.xlu0 %v194_v42 }
 0x1e6   :  { %v196_v44 = vpop.xlane.xlu0 %195 }
 0x1e7   :  { %v198_v45 = vmul.f32 0.03125, %v196_v44 }
 0x1e9   :  { %v276_v48 = vmul.f32 %v198_v45, %v74_v47 }
 0x1eb   :  { %v280_v50 = vrot.slane %v276_v48, %v279_v49 }
 0x1f6   :  { %v272_v52 = vpop.f32.mrb[0].mxu1 }
 0x1f7   :  { %v281_v53 = vadd.f32 %v280_v50, %v272_v52  ;;  %v391_v54 = vpop.f32.mrb[1].mxu1 }
 0x1f9   :  { %v286_v55 = vadd.f32 %v364_v51, %v281_v53 }
 0x1fb   :  { %v287_v57 = vmax.f32 %v286_v55, 0.0 }
 0x1fd   :  { %v288_v58 = vsel %vm165_vm5, %v287_v57, 0.0  ;;  %v323_v59 = vmul.f32 %v365_v56, %v287_v57 }
 0x1fe   :  { %v289_v60 = vrot.slane %v288_v58, 4 }
 0x1ff   :  { %v324_v61 = vsel %vm165_vm5, %v323_v59, 0.0 }
 0x200   :  { %v290_v62 = vadd.f32 %v289_v60, %v288_v58  ;;  %325 = vadd.xlane.f32.xlu1 %v324_v61 }
 0x202   :  { %v291_v63 = vrot.slane %v290_v62, 2 }
 0x204   :  { %v292_v0 = vadd.f32 %v291_v63, %v290_v62 }
 0x206   :  { %v293_v1 = vrot.slane %v292_v0, 1 }
 0x208   :  { %v294_v2 = vadd.f32 %v293_v1, %v292_v0 }
 0x20a   :  { %v295_v3 = vmul.f32 0.125, %v294_v2 }
 0x20c   :  { %v296_v4 = vsub.f32 %v287_v57, %v295_v3 }
 0x20e   :  { %v297_v5 = vmul.f32 %v296_v4, %v296_v4 }
 0x210   :  { %v298_v6 = vsel %vm165_vm5, %v297_v5, 0.0 }
 0x211   :  { %v299_v7 = vrot.slane %v298_v6, 4 }
 0x213   :  { %v300_v8 = vadd.f32 %v299_v7, %v298_v6 }
 0x215   :  { %v301_v9 = vrot.slane %v300_v8, 2 }
 0x217   :  { %v302_v10 = vadd.f32 %v301_v9, %v300_v8 }
 0x219   :  { %v303_v11 = vrot.slane %v302_v10, 1 }
 0x21b   :  { %v304_v12 = vadd.f32 %v303_v11, %v302_v10 }
 0x21d   :  { %v305_v13 = vmul.f32 0.125, %v304_v12 }
 0x21f   :  { %v306_v14 = vadd.f32 1e-08, %v305_v13 }
 0x221   :  { %415 = vrsqrt.f32 %v306_v14  ;;  %vm309_vm8 = vcmp.eq.f32.partialorder %v306_v14, inf  ;;  %v312_v17 = vand.u32 2147483648, %v306_v14  ;;  %vm311_vm9 = vcmp.eq.f32.partialorder %v306_v14, 0.0 }
 0x22b   :  { %v416_v15 = vpop.eup %415 }
 0x22c   :  { %v308_v16 = vmul.f32 %v416_v15, %v306_v14 }
 0x22e   :  { %v310_v18 = vsel %vm309_vm8, %v306_v14, %v308_v16 }
 0x22f   :  { %v313_v19 = vsel %vm311_vm9, %v312_v17, %v310_v18 }
 0x230   :  { %v314_v20 = vmul.f32 1.069045, %v313_v19 }
 0x232   :  { %v315_v21 = vsel %vm165_vm5, %v314_v20, 0.0 }
 0x233   :  { %316 = vadd.xlane.f32.xlu0 %v315_v21 }
 0x28d   :  { %v326_v27 = vpop.xlane.xlu1 %325 }
 0x2c0   :  { %v317_v23 = vpop.xlane.xlu0 %316 }
 0x2c1   :  { %v318_v24 = vmul.f32 0.03125, %v317_v23 }
 0x2c3   :  { %v328_v26 = vmul.f32 %v327_v22, %v318_v24 }
 0x2c5   :  { %v329_v29 = vadd.f32 %v328_v26, %v326_v27 }
 0x2c7   :  { %v331_v31 = vadd.f32 %v330_v28, %v329_v29 }
 0x2c9   :  { %v338_v32 = vrot.slane %v331_v31, %v337_v30 }
 0x2cb   :  { %341 = vst.msk [vmem:[#allocation10] sm:$0x1] %vm340_vm10, %v338_v32 }
 0x2cc   :  { %506 = shalt.err (!%p503_p5)
}
 0x2cd   :  { %s507_s21 = scalar_lea.hbm %s648_s5, 16 }
 0x2ce   :  { %p508_p6 = scmp.ne.s32.totalorder %s648_s5, %s507_s21  ;;  %p511_p7 = scmp.lt.u32.totalorder %s507_s21, %s648_s5 }
 0x2d0   :  { %p513_p8 = pnand %p511_p7, %p508_p6 }
 0x2d2   :  { %516 = shalt.err (!%p513_p8)
}
 0x2d3   :  { %351 = dma.vmem_to_hbm [thread:$0]  %s349_s17, 16, %s648_s5, [#allocation4]  }
 0x2d4   :  { %523 = dma.done.wait [#allocation4], 16  }
 0x2d5   :  { %524 = vsyncadd [#allocation4], 4294967280 }
 0x2d6   :  { %355 = vsyncpa [#allocation3], 1 }
 0x2d7   :  { %356 = vsyncpa [#allocation7], 1 }
 0x2d8   :  { %357 = vsyncpa [#allocation4], 1 }
 0x2d9   :  { %358 = vsyncpa [#allocation5], 1 }

</bundles_post_ra>
